<compile_context>
chip_gen: v6e
topology: v6e:2x2x1
jax: 0.10.0
libtpu: 0.0.40
codegen_flags: <defaults>
</compile_context>

<pallas_src>
import jax
import jax.numpy as jnp
from jax.experimental import pallas as pl
from jax.experimental.pallas import tpu as pltpu


def _round_up(v, m):
    return ((v + m - 1) // m) * m


def _pad2d(a, rows, cols):
    r, c = a.shape
    if r == rows and c == cols:
        return a
    return jnp.pad(a, ((0, rows - r), (0, cols - c)))


def _col_chunks(total, max_width=512):
    """Static (start, width) column chunks; widths are multiples of 128."""
    chunks, start = [], 0
    while start < total:
        width = min(max_width, total - start)
        chunks.append((start, width))
        start += width
    return tuple(chunks)


def _resident_spec(shape, index_map):
    """Constant-index BlockSpec; single-buffered when this jax supports pipeline_mode."""
    if hasattr(pl, "Buffered"):
        try:
            return pl.BlockSpec(shape, index_map, pipeline_mode=pl.Buffered(1))
        except TypeError:
            pass
    return pl.BlockSpec(shape, index_map)


def _make_kernel(out_chunks, compute_dtype):
    def kernel(x_ref,
               w1_ref, b1_ref,
               w2_ref, b2_ref,
               w3_ref, b3_ref,
               w4_ref, b4_ref,
               xx_ref, emb_ref):
        # ---- Encoder: Linear(d_in->d_hid)+ReLU, Linear(d_hid->d_out)+ReLU ----
        h = jnp.dot(x_ref[...], w1_ref[...], preferred_element_type=jnp.float32)
        h = jnp.maximum(h + b1_ref[...], 0.0).astype(compute_dtype)
        e = jnp.dot(h, w2_ref[...], preferred_element_type=jnp.float32)
        e = jnp.maximum(e + b2_ref[...], 0.0)
        emb_ref[...] = e.astype(emb_ref.dtype)
        # ---- Decoder: Linear(d_out->d_hid)+ReLU, Linear(d_hid->d_in)+ReLU ----
        d = jnp.dot(e.astype(compute_dtype), w3_ref[...],
                    preferred_element_type=jnp.float32)
        d = jnp.maximum(d + b3_ref[...], 0.0).astype(compute_dtype)
        # Last matmul chunked along output columns: no full (tile_m, d_in_p) f32
        # intermediate; each chunk is biased, ReLU'd and stored immediately so
        # stores of early chunks overlap MXU work on later ones.
        for start, width in out_chunks:
            o = jnp.dot(d, w4_ref[:, start:start + width],
                        preferred_element_type=jnp.float32)
            o = jnp.maximum(o + b4_ref[:, start:start + width], 0.0)
            xx_ref[:, start:start + width] = o.astype(xx_ref.dtype)
    return kernel


def autoencoder_forward(x, params, *, tile_m=512,
                        compute_dtype=jnp.bfloat16,
                        out_dtype=jnp.bfloat16):
    """Fused autoencoder forward. Returns (reconstruction xx, embeddings).

    compute_dtype: MXU operand dtype (bf16 default; pass jnp.float32 for exactness).
    out_dtype:     HBM writeback dtype for xx/embeddings (bf16 default -> half the
                   dominant HBM stream; cast outside if f32 is required downstream).
    """
    (w1, b1), (w2, b2), (w3, b3), (w4, b4) = params
    B, d_in = x.shape
    d_hid = w1.shape[1]
    d_out = w2.shape[1]

    # Lane-dense padding (multiples of 128) for every feature dim; zero pads + ReLU keep
    # padded columns exactly zero, so slicing them off afterwards preserves semantics.
    d_in_p = _round_up(d_in, 128)
    d_hid_p = _round_up(d_hid, 128)
    d_out_p = _round_up(d_out, 128)

    # Batch tile: multiple of 16 (bf16 row packing); guarantee >= 2 grid steps for
    # mid-size batches so the "parallel" axis can shard across v7x's two TensorCores.
    if B <= tile_m:
        if B > 64:
            tile_m = _round_up(-(-B // 2), 16)   # ceil(B/2), 16-aligned -> grid >= 2
        else:
            tile_m = max(16, _round_up(B, 16))
    else:
        tile_m = _round_up(tile_m, 16)
    B_p = _round_up(B, tile_m)

    # Compute-dtype MXU operands (x + weights); biases stay f32 (added post-accumulation).
    xp = _pad2d(x, B_p, d_in_p).astype(compute_dtype)
    w1p = _pad2d(w1, d_in_p, d_hid_p).astype(compute_dtype)
    w2p = _pad2d(w2, d_hid_p, d_out_p).astype(compute_dtype)
    w3p = _pad2d(w3, d_out_p, d_hid_p).astype(compute_dtype)
    w4p = _pad2d(w4, d_hid_p, d_in_p).astype(compute_dtype)
    b1p = _pad2d(b1, 1, d_hid_p).astype(jnp.float32)
    b2p = _pad2d(b2, 1, d_out_p).astype(jnp.float32)
    b3p = _pad2d(b3, 1, d_hid_p).astype(jnp.float32)
    b4p = _pad2d(b4, 1, d_in_p).astype(jnp.float32)

    grid = (B_p // tile_m,)

    def row_map(i):
        return (i, 0)

    def const_map(i):
        # Same block index every step => stays VMEM-resident (no re-DMA per step).
        return (0, 0)

    in_specs = [
        pl.BlockSpec((tile_m, d_in_p), row_map),            # x (streamed per step)
        _resident_spec((d_in_p, d_hid_p), const_map),        # w1 (single-buffered)
        _resident_spec((1, d_hid_p), const_map),             # b1
        _resident_spec((d_hid_p, d_out_p), const_map),       # w2
        _resident_spec((1, d_out_p), const_map),             # b2
        _resident_spec((d_out_p, d_hid_p), const_map),       # w3
        _resident_spec((1, d_hid_p), const_map),             # b3
        _resident_spec((d_hid_p, d_in_p), const_map),        # w4
        _resident_spec((1, d_in_p), const_map),               # b4
    ]
    out_specs = [
        pl.BlockSpec((tile_m, d_in_p), row_map),             # xx (reconstruction)
        pl.BlockSpec((tile_m, d_out_p), row_map),            # embeddings (lane-dense 128)
    ]
    out_shape = [
        jax.ShapeDtypeStruct((B_p, d_in_p), out_dtype),
        jax.ShapeDtypeStruct((B_p, d_out_p), out_dtype),
    ]

    # VMEM budget: single-buffered weights + double-buffered x/xx/emb streams + f32
    # intermediates (with margin). Clamp to [48 MiB, 96 MiB] -- safe on v7x (64 MiB/TC),
    # roomy on v5e/v6e (128 MiB).
    cd_b = jnp.dtype(compute_dtype).itemsize
    out_b = jnp.dtype(out_dtype).itemsize
    est = (d_in_p * d_hid_p * 2 + d_hid_p * d_out_p * 2) * cd_b          # weights
    est += (2 * d_hid_p + d_out_p + d_in_p) * 4                          # biases
    est += 2 * tile_m * d_in_p * cd_b                                    # x (x2 buffers)
    est += 2 * tile_m * (d_in_p + d_out_p) * out_b                       # xx + emb (x2)
    est += tile_m * (2 * d_hid_p + d_out_p + min(512, d_in_p)) * 4 * 2   # f32 intermediates
    vmem_limit = int(min(max(est + (16 << 20), 48 << 20), 96 << 20))

    kernel = _make_kernel(_col_chunks(d_in_p, 512), compute_dtype)

    xx_p, emb_p = pl.pallas_call(
        kernel,
        grid_spec=pltpu.PrefetchScalarGridSpec(
            num_scalar_prefetch=0,
            grid=grid,
            in_specs=in_specs,
            out_specs=out_specs,
        ),
        out_shape=out_shape,
        compiler_params=pltpu.CompilerParams(
            dimension_semantics=("parallel",),   # shards batch across v7x's 2 TCs
            vmem_limit_bytes=vmem_limit,
        ),
    )(xp, w1p, b1p, w2p, b2p, w3p, b3p, w4p, b4p)

    # Slice off batch/feature padding (padded columns are exactly zero).
    return xx_p[:B, :d_in], emb_p[:B, :d_out]


def init_params(key, d_in, d_hid, d_out, dtype=jnp.float32):
    """Deterministic init mimicking nn.Linear default (uniform +/- 1/sqrt(fan_in))."""
    dims = [(d_in, d_hid), (d_hid, d_out), (d_out, d_hid), (d_hid, d_in)]
    params = []
    for (fan_in, fan_out) in dims:
        key, kw, kb = jax.random.split(key, 3)
        bound = 1.0 / jnp.sqrt(fan_in)
        w = jax.random.uniform(kw, (fan_in, fan_out), dtype, -bound, bound)
        b = jax.random.uniform(kb, (1, fan_out), dtype, -bound, bound)
        params.append((w, b))
    return params


def reference_forward(x, params):
    h = x
    outs = []
    for (w, b) in params:
        h = jnp.maximum(jnp.dot(h, w) + b, 0.0)
        outs.append(h)
    return outs[-1], outs[1]  # (xx, embeddings)


if __name__ == "__main__":
    # Small shapes consistent with the module structure (d_in > d_hid > d_out=100).
    B, d_in, d_hid, d_out = 256, 256, 128, 100
    key = jax.random.PRNGKey(0)
    key, kx = jax.random.split(key)
    x = jax.random.normal(kx, (B, d_in), jnp.float32)
    params = init_params(key, d_in, d_hid, d_out)

    # Default tile_m clamps to 128 here -> 2 grid steps (exercises the megacore path).
    xx, emb = autoencoder_forward(x, params)
    jax.block_until_ready((xx, emb))

    xx_ref, emb_ref = reference_forward(x, params)
    # bf16 MXU operands + bf16 writeback -> loosened (but still tight) tolerances.
    assert xx.shape == (B, d_in) and emb.shape == (B, d_out)
    assert jnp.allclose(xx.astype(jnp.float32), xx_ref, atol=5e-2, rtol=5e-2), \
        "reconstruction mismatch"
    assert jnp.allclose(emb.astype(jnp.float32), emb_ref, atol=5e-2, rtol=5e-2), \
        "embedding mismatch"
    print("KERNEL_OK")
</pallas_src>

<mosaic_0001>
module attributes {stable_mosaic.version = 11 : i64} {
  func.func @kernel(%arg0: i32, %arg1: memref<128x256xbf16, #tpu.memory_space<vmem>>, %arg2: memref<256x128xbf16, #tpu.memory_space<vmem>>, %arg3: memref<1x128xf32, #tpu.memory_space<vmem>>, %arg4: memref<128x128xbf16, #tpu.memory_space<vmem>>, %arg5: memref<1x128xf32, #tpu.memory_space<vmem>>, %arg6: memref<128x128xbf16, #tpu.memory_space<vmem>>, %arg7: memref<1x128xf32, #tpu.memory_space<vmem>>, %arg8: memref<128x256xbf16, #tpu.memory_space<vmem>>, %arg9: memref<1x256xf32, #tpu.memory_space<vmem>>, %arg10: memref<128x256xbf16, #tpu.memory_space<vmem>>, %arg11: memref<128x128xbf16, #tpu.memory_space<vmem>>) attributes {dimension_semantics = [#tpu.dimension_semantics<parallel>], iteration_bounds = array<i64: 2>, scalar_prefetch = 0 : i64, scratch_operands = 0 : i64, tpu.core_type = #tpu.core_type<tc>, window_params = [{transform_indices = @transform_0, window_bounds = array<i64: 128, 256>}, {pipeline_mode = #tpu.pipeline_mode<synchronous>, transform_indices = @transform_1, window_bounds = array<i64: 256, 128>}, {pipeline_mode = #tpu.pipeline_mode<synchronous>, transform_indices = @transform_2, window_bounds = array<i64: 1, 128>}, {pipeline_mode = #tpu.pipeline_mode<synchronous>, transform_indices = @transform_3, window_bounds = array<i64: 128, 128>}, {pipeline_mode = #tpu.pipeline_mode<synchronous>, transform_indices = @transform_4, window_bounds = array<i64: 1, 128>}, {pipeline_mode = #tpu.pipeline_mode<synchronous>, transform_indices = @transform_5, window_bounds = array<i64: 128, 128>}, {pipeline_mode = #tpu.pipeline_mode<synchronous>, transform_indices = @transform_6, window_bounds = array<i64: 1, 128>}, {pipeline_mode = #tpu.pipeline_mode<synchronous>, transform_indices = @transform_7, window_bounds = array<i64: 128, 256>}, {pipeline_mode = #tpu.pipeline_mode<synchronous>, transform_indices = @transform_8, window_bounds = array<i64: 1, 256>}, {transform_indices = @transform_9, window_bounds = array<i64: 128, 256>}, {transform_indices = @transform_10, window_bounds = array<i64: 128, 128>}]} {
    %c0 = arith.constant 0 : index
    %c0_0 = arith.constant 0 : index
    %0 = vector.load %arg1[%c0, %c0_0] : memref<128x256xbf16, #tpu.memory_space<vmem>>, vector<128x256xbf16>
    %c0_1 = arith.constant 0 : index
    %c0_2 = arith.constant 0 : index
    %1 = vector.load %arg2[%c0_1, %c0_2] : memref<256x128xbf16, #tpu.memory_space<vmem>>, vector<256x128xbf16>
    %cst = arith.constant dense<0.000000e+00> : vector<128x128xf32>
    %2 = tpu.matmul %0, %1, %cst {dimension_numbers = #tpu.dot_dimension_numbers<[1], [0], [0], [1], [0, 0, 1, 1], [], []>} : vector<128x256xbf16>, vector<256x128xbf16>, vector<128x128xf32> -> vector<128x128xf32>
    %c0_3 = arith.constant 0 : index
    %c0_4 = arith.constant 0 : index
    %3 = vector.load %arg3[%c0_3, %c0_4] : memref<1x128xf32, #tpu.memory_space<vmem>>, vector<1x128xf32>
    %4 = vector.broadcast %3 : vector<1x128xf32> to vector<128x128xf32>
    %5 = arith.addf %2, %4 : vector<128x128xf32>
    %cst_5 = arith.constant 0.000000e+00 : f32
    %6 = vector.broadcast %cst_5 : f32 to vector<128x128xf32>
    %7 = arith.maximumf %5, %6 : vector<128x128xf32>
    %8 = arith.truncf %7 : vector<128x128xf32> to vector<128x128xbf16>
    %c0_6 = arith.constant 0 : index
    %c0_7 = arith.constant 0 : index
    %9 = vector.load %arg4[%c0_6, %c0_7] : memref<128x128xbf16, #tpu.memory_space<vmem>>, vector<128x128xbf16>
    %cst_8 = arith.constant dense<0.000000e+00> : vector<128x128xf32>
    %10 = tpu.matmul %8, %9, %cst_8 {dimension_numbers = #tpu.dot_dimension_numbers<[1], [0], [0], [1], [0, 0, 1, 1], [], []>} : vector<128x128xbf16>, vector<128x128xbf16>, vector<128x128xf32> -> vector<128x128xf32>
    %c0_9 = arith.constant 0 : index
    %c0_10 = arith.constant 0 : index
    %11 = vector.load %arg5[%c0_9, %c0_10] : memref<1x128xf32, #tpu.memory_space<vmem>>, vector<1x128xf32>
    %12 = vector.broadcast %11 : vector<1x128xf32> to vector<128x128xf32>
    %13 = arith.addf %10, %12 : vector<128x128xf32>
    %cst_11 = arith.constant 0.000000e+00 : f32
    %14 = vector.broadcast %cst_11 : f32 to vector<128x128xf32>
    %15 = arith.maximumf %13, %14 : vector<128x128xf32>
    %16 = arith.truncf %15 : vector<128x128xf32> to vector<128x128xbf16>
    %c0_12 = arith.constant 0 : index
    %c0_13 = arith.constant 0 : index
    %17 = vector.load %arg11[%c0_12, %c0_13] : memref<128x128xbf16, #tpu.memory_space<vmem>>, vector<128x128xbf16>
    tpu.vector_store %arg11[%c0_12, %c0_13], %16 {strides = array<i32>} : memref<128x128xbf16, #tpu.memory_space<vmem>>, vector<128x128xbf16>,
    %18 = arith.truncf %15 : vector<128x128xf32> to vector<128x128xbf16>
    %c0_14 = arith.constant 0 : index
    %c0_15 = arith.constant 0 : index
    %19 = vector.load %arg6[%c0_14, %c0_15] : memref<128x128xbf16, #tpu.memory_space<vmem>>, vector<128x128xbf16>
    %cst_16 = arith.constant dense<0.000000e+00> : vector<128x128xf32>
    %20 = tpu.matmul %18, %19, %cst_16 {dimension_numbers = #tpu.dot_dimension_numbers<[1], [0], [0], [1], [0, 0, 1, 1], [], []>} : vector<128x128xbf16>, vector<128x128xbf16>, vector<128x128xf32> -> vector<128x128xf32>
    %c0_17 = arith.constant 0 : index
    %c0_18 = arith.constant 0 : index
    %21 = vector.load %arg7[%c0_17, %c0_18] : memref<1x128xf32, #tpu.memory_space<vmem>>, vector<1x128xf32>
    %22 = vector.broadcast %21 : vector<1x128xf32> to vector<128x128xf32>
    %23 = arith.addf %20, %22 : vector<128x128xf32>
    %cst_19 = arith.constant 0.000000e+00 : f32
    %24 = vector.broadcast %cst_19 : f32 to vector<128x128xf32>
    %25 = arith.maximumf %23, %24 : vector<128x128xf32>
    %26 = arith.truncf %25 : vector<128x128xf32> to vector<128x128xbf16>
    %c0_20 = arith.constant 0 : index
    %c0_21 = arith.constant 0 : index
    %27 = vector.load %arg8[%c0_20, %c0_21] : memref<128x256xbf16, #tpu.memory_space<vmem>>, vector<128x256xbf16>
    %cst_22 = arith.constant dense<0.000000e+00> : vector<128x256xf32>
    %28 = tpu.matmul %26, %27, %cst_22 {dimension_numbers = #tpu.dot_dimension_numbers<[1], [0], [0], [1], [0, 0, 1, 1], [], []>} : vector<128x128xbf16>, vector<128x256xbf16>, vector<128x256xf32> -> vector<128x256xf32>
    %c0_23 = arith.constant 0 : index
    %c0_24 = arith.constant 0 : index
    %29 = vector.load %arg9[%c0_23, %c0_24] : memref<1x256xf32, #tpu.memory_space<vmem>>, vector<1x256xf32>
    %30 = vector.broadcast %29 : vector<1x256xf32> to vector<128x256xf32>
    %31 = arith.addf %28, %30 : vector<128x256xf32>
    %cst_25 = arith.constant 0.000000e+00 : f32
    %32 = vector.broadcast %cst_25 : f32 to vector<128x256xf32>
    %33 = arith.maximumf %31, %32 : vector<128x256xf32>
    %34 = arith.truncf %33 : vector<128x256xf32> to vector<128x256xbf16>
    %c0_26 = arith.constant 0 : index
    %c0_27 = arith.constant 0 : index
    %35 = vector.load %arg10[%c0_26, %c0_27] : memref<128x256xbf16, #tpu.memory_space<vmem>>, vector<128x256xbf16>
    tpu.vector_store %arg10[%c0_26, %c0_27], %34 {strides = array<i32>} : memref<128x256xbf16, #tpu.memory_space<vmem>>, vector<128x256xbf16>,
    return
  }
  func.func @transform_0(%arg0: i32) -> (i32, i32) {
    %c0_i32 = arith.constant 0 : i32
    %c0_i32_0 = arith.constant 0 : i32
    return %arg0, %c0_i32 : i32, i32
  }
  func.func @transform_1(%arg0: i32) -> (i32, i32) {
    %c0_i32 = arith.constant 0 : i32
    %c0_i32_0 = arith.constant 0 : i32
    %c0_i32_1 = arith.constant 0 : i32
    return %c0_i32, %c0_i32_0 : i32, i32
  }
  func.func @transform_2(%arg0: i32) -> (i32, i32) {
    %c0_i32 = arith.constant 0 : i32
    %c0_i32_0 = arith.constant 0 : i32
    %c0_i32_1 = arith.constant 0 : i32
    return %c0_i32, %c0_i32_0 : i32, i32
  }
  func.func @transform_3(%arg0: i32) -> (i32, i32) {
    %c0_i32 = arith.constant 0 : i32
    %c0_i32_0 = arith.constant 0 : i32
    %c0_i32_1 = arith.constant 0 : i32
    return %c0_i32, %c0_i32_0 : i32, i32
  }
  func.func @transform_4(%arg0: i32) -> (i32, i32) {
    %c0_i32 = arith.constant 0 : i32
    %c0_i32_0 = arith.constant 0 : i32
    %c0_i32_1 = arith.constant 0 : i32
    return %c0_i32, %c0_i32_0 : i32, i32
  }
  func.func @transform_5(%arg0: i32) -> (i32, i32) {
    %c0_i32 = arith.constant 0 : i32
    %c0_i32_0 = arith.constant 0 : i32
    %c0_i32_1 = arith.constant 0 : i32
    return %c0_i32, %c0_i32_0 : i32, i32
  }
  func.func @transform_6(%arg0: i32) -> (i32, i32) {
    %c0_i32 = arith.constant 0 : i32
    %c0_i32_0 = arith.constant 0 : i32
    %c0_i32_1 = arith.constant 0 : i32
    return %c0_i32, %c0_i32_0 : i32, i32
  }
  func.func @transform_7(%arg0: i32) -> (i32, i32) {
    %c0_i32 = arith.constant 0 : i32
    %c0_i32_0 = arith.constant 0 : i32
    %c0_i32_1 = arith.constant 0 : i32
    return %c0_i32, %c0_i32_0 : i32, i32
  }
  func.func @transform_8(%arg0: i32) -> (i32, i32) {
    %c0_i32 = arith.constant 0 : i32
    %c0_i32_0 = arith.constant 0 : i32
    %c0_i32_1 = arith.constant 0 : i32
    return %c0_i32, %c0_i32_0 : i32, i32
  }
  func.func @transform_9(%arg0: i32) -> (i32, i32) {
    %c0_i32 = arith.constant 0 : i32
    %c0_i32_0 = arith.constant 0 : i32
    return %arg0, %c0_i32 : i32, i32
  }
  func.func @transform_10(%arg0: i32) -> (i32, i32) {
    %c0_i32 = arith.constant 0 : i32
    %c0_i32_0 = arith.constant 0 : i32
    return %arg0, %c0_i32 : i32, i32
  }
}

</mosaic_0001>

<bundles_post_ra>
// kernel: tpu_custom_call.1
= control target key start
LH: loop header
LB: loop body
LE: loop exit
PB: predicated region body
PF: predicated region fallthrough
CT: control target
= control target key end

     0   :  { %s3069_s0 = inlined_call_operand.hbm [shape: bf16[256,256], index: 0, kind: input, shape index: {}]   ;;  %s3070_s1 = inlined_call_operand.hbm [shape: bf16[256,128], index: 1, kind: input, shape index: {}]   ;;  %s3071_s2 = inlined_call_operand.vmem [shape: f32[1,128], index: 2, kind: input, shape index: {}]   ;;  %s3072_s3 = inlined_call_operand.hbm [shape: bf16[128,128], index: 3, kind: input, shape index: {}]   ;;  %s3073_s4 = inlined_call_operand.vmem [shape: f32[1,128], index: 4, kind: input, shape index: {}]   ;;  %s3074_s5 = inlined_call_operand.hbm [shape: bf16[128,128], index: 5, kind: input, shape index: {}]   ;;  %s3075_s6 = inlined_call_operand.vmem [shape: f32[1,128], index: 6, kind: input, shape index: {}]   ;;  %s3076_s7 = inlined_call_operand.hbm [shape: bf16[128,256], index: 7, kind: input, shape index: {}]   ;;  %s3077_s8 = inlined_call_operand.vmem [shape: f32[1,256], index: 8, kind: input, shape index: {}]   ;;  %s3078_s9 = inlined_call_operand.hbm [shape: bf16[256,256], index: 9, kind: output, shape index: {0}]   ;;  %s3079_s10 = inlined_call_operand.hbm [shape: bf16[256,128], index: 10, kind: output, shape index: {1}]  }
   0x1   :  { %3086 = sst [smem:[#allocation19_spill]] %s3070_s1 }
   0x2   :  { %3087 = sst [smem:[#allocation20_spill]] %s3072_s3 }
   0x3   :  { %3088 = sst [smem:[#allocation21_spill]] %s3074_s5 }
   0x4   :  { %3089 = sst [smem:[#allocation22_spill]] %s3076_s7 }
   0x5   :  { %16 = vsyncpa [#allocation3], 0 }
   0x6   :  { %18 = vsyncpa [#allocation3 + $0x1], 0 }
   0x7   :  { %19 = vsyncpa [#allocation6], 0 }
   0x8   :  { %20 = vsyncpa [#allocation9], 0 }
   0x9   :  { %21 = vsyncpa [#allocation4], 0 }
   0xa   :  { %23 = vsyncpa [#allocation4 + $0x1], 0 }
   0xb   :  { %24 = vsyncpa [#allocation13], 0 }
   0xc   :  { %26 = vsyncpa [#allocation13 + $0x1], 0  ;;  %s2679_s13 = smov 0   ;;  %s2681_s14 = smov 0  }
   0xd   :  { %s2683_s15 = smov 0   ;;  %s2685_s16 = smov 0  }
   0xe LB: > { %s2700_s17 = sadd.s32 4294967295, %s2606_s16   ;;  %s1804_s18 = sadd.s32 4294967294, %s2606_s16   ;;  %s2606_s16 = sphi %s2685_s16, %s3115_s16   ;;  %s2602_s15 = sphi %s2683_s15, %s3114_s15   ;;  %s2598_s14 = sphi %s2681_s14, %s3113_s14   ;;  %s2594_s13 = sphi %s2679_s13, %s3112_s13  }
   0xf   : > { %p52_p0 = scmp.ne.s32.totalorder %s2598_s14, %s2594_s13  ;;  %p3080_p1 = scmp.eq.s32.totalorder %s2700_s17, 0 }
  0x10   : > { %p250_p3 = scmp.eq.s32.totalorder %s1804_s18, 1  ;;  %p1805_p5 = scmp.ge.s32.totalorder %s2606_s16, 1 }
  0x11   : > { %p2709_p4 = por %p3080_p1, %p52_p0  ;;  %p283_p7 = scmp.lt.s32.totalorder %s2606_s16, 3 }
  0x12   : > { %p2714_p6 = por %p250_p3, %p52_p0  ;;  %s2608_s22 = smov [#allocation5]  }
  0x13   : > { %s3090_s19 = scalar_select %p2709_p4, 1, 0 }
  0x14   : > { %s3091_s20 = scalar_select %p2714_p6, 1, 0 }
  0x15   : > { %p2719_p8 = pnand %p1805_p5, %p283_p7  ;;  %s295_s23 = sshll.u32 %s2608_s22, 4  ;;  %s296_s23 = int_to_ptr.vmem [resolvable:$true] %s295_s23 }
  0x16   : > { %s2609_s25 = smov [#allocation8]   ;;  %s2610_s27 = smov [#allocation7]  }
  0x17   : > { %s3092_s21 = scalar_select %p2719_p8, 1, 0 }
  0x18   : > { %p2213_p9 = pneg %p2719_p8  ;;  %s327_s26 = sshll.u32 %s2609_s25, 4  ;;  %s328_s26 = int_to_ptr.vmem [resolvable:$true] %s327_s26 }
  0x19   : > { %s311_s28 = sshll.u32 %s2610_s27, 4  ;;  %s2383_s29 = scalar_lea.vmem %s296_s23, 2048  ;;  %s312_s28 = int_to_ptr.vmem [resolvable:$true] %s311_s28 }
  0x1a   : > { %p2728_p11 = pnand %p2213_p9, %p3080_p1  ;;  %p2384_p13 = scmp.ne.s32.totalorder %s296_s23, %s2383_s29 }
  0x1b   : > { %p2391_p5 = scmp.lt.s32.totalorder %s296_s23, %s296_s23  ;;  %p2392_p7 = scmp.lt.s32.totalorder %s2383_s29, %s2383_s29 }
  0x1c   : > { %p2374_p12 = pneg %p2728_p11 }
  0x1d   : > { %p2393_p9 = por %p2392_p7, %p2391_p5 }
  0x1e   : > { %p2386_p0 = pnand %p2384_p13, %p2374_p12 }
  0x20   : > { %p2387_p3 = pneg %p2386_p0 }
  0x22   : > { %p2394_p10 = pnand %p2393_p9, %p2387_p3 }
  0x24   : > { %2397 = shalt.err (!%p2394_p10)
}
  0x25   : > { %s2611_s30 = smov 64   ;;  %s2612_s11 = smov 4  }
  0x26   : > { %s3094_s1 = sld [smem:[#allocation19_spill]]  ;;  %s2409_s22 = scalar_lea.vmem %s328_s26, 1024 }
  0x27   : > { %p2410_p1 = scmp.ne.s32.totalorder %s328_s26, %s2409_s22  ;;  %p2417_p2 = scmp.lt.s32.totalorder %s328_s26, %s328_s26 }
  0x28   : > { %p2418_p6 = scmp.lt.s32.totalorder %s2409_s22, %s2409_s22 }
  0x29   : > { %p2412_p13 = pnand %p2410_p1, %p2374_p12 }
  0x2a   : > { %p2419_p5 = por %p2418_p6, %p2417_p2 }
  0x2b   : > { %p2413_p0 = pneg %p2412_p13 }
  0x2c   : > { %2216 = dma.hbm_to_vmem [thread:$0]  (!%p2728_p11), %s3094_s1, 2048, %s296_s23, [#allocation6], %s2611_s30, %s2611_s30, %s2612_s11  }
  0x2d   : > { %p2420_p3 = pnand %p2419_p5, %p2413_p0 }
  0x2f   : > { %2423 = shalt.err (!%p2420_p3)
}
  0x30   : > { %s3095_s5 = sld [smem:[#allocation21_spill]]  ;;  %s2435_s23 = scalar_lea.vmem %s312_s28, 1024 }
  0x31   : > { %p2436_p10 = scmp.ne.s32.totalorder %s312_s28, %s2435_s23  ;;  %p2443_p9 = scmp.lt.s32.totalorder %s312_s28, %s312_s28 }
  0x32   : > { %p2444_p13 = scmp.lt.s32.totalorder %s2435_s23, %s2435_s23 }
  0x33   : > { %p2438_p7 = pnand %p2436_p10, %p2374_p12 }
  0x34   : > { %p2445_p4 = por %p2444_p13, %p2443_p9 }
  0x35   : > { %p2439_p1 = pneg %p2438_p7 }
  0x36   : > { %2222 = dma.hbm_to_vmem [thread:$0]  (!%p2728_p11), %s3095_s5, 1024, %s328_s26, [#allocation9], %s2611_s30, %s2611_s30, %s2612_s11  }
  0x37   : > { %p2446_p2 = pnand %p2445_p4, %p2439_p1 }
  0x39   : > { %2449 = shalt.err (!%p2446_p2)
}
  0x3a   : > { %s3096_s3 = sld [smem:[#allocation20_spill]]  ;;  %s2613_s26 = smov [#allocation10]  }
  0x3b   : > { %s343_s18 = sshll.u32 %s2613_s26, 4  ;;  %s344_s18 = int_to_ptr.vmem [resolvable:$true] %s343_s18 }
  0x3c   : > { %s2461_s22 = scalar_lea.vmem %s344_s18, 2048  ;;  %p2469_p3 = scmp.lt.s32.totalorder %s344_s18, %s344_s18 }
  0x3d   : > { %p2462_p6 = scmp.ne.s32.totalorder %s344_s18, %s2461_s22  ;;  %p2470_p10 = scmp.lt.s32.totalorder %s2461_s22, %s2461_s22 }
  0x3f   : > { %p2464_p0 = pnand %p2462_p6, %p2374_p12  ;;  %p2471_p4 = por %p2470_p10, %p2469_p3 }
  0x40   : > { %2219 = dma.hbm_to_vmem [thread:$0]  (!%p2728_p11), %s3096_s3, 1024, %s312_s28, [#allocation6], %s2611_s30, %s2611_s30, %s2612_s11  }
  0x41   : > { %p2465_p5 = pneg %p2464_p0 }
  0x43   : > { %p2472_p7 = pnand %p2471_p4, %p2465_p5 }
  0x45   : > { %2475 = shalt.err (!%p2472_p7)
}
  0x46   : > { %s3082_s25 = smov 128   ;;  %s3083_s28 = smov 8  }
  0x47   : > { %s3097_s7 = sld [smem:[#allocation22_spill]]  ;;  %s2770_s27 = sadd.s32 1, %s2606_s16  }
  0x48   : > { %s36_s23 = ssub.s32 %s2606_s16, %s2770_s27  ;;  %s39_s29 = sadd.s32 1, %s2602_s15 }
  0x49   : > { %p37_p12 = scmp.eq.s32.totalorder %s36_s23, 0  ;;  %p46_p1 = scmp.ne.s32.totalorder %s2602_s15, %s2598_s14 }
  0x4a   : > { %p47_p9 = scmp.eq.s32.totalorder %s2606_s16, 0  ;;  %p3098_p2 = scmp.eq.s32.totalorder %s2700_s17, 1 }
  0x4b   : > { %s2779_s12 = scalar_select %p37_p12, %s2602_s15, %s39_s29  }
  0x4c   : > { %p48_p13 = por %p47_p9, %p46_p1  ;;  %p2783_p6 = por %p3098_p2, %p46_p1 }
  0x4d   : > { %2225 = dma.hbm_to_vmem [thread:$0]  (!%p2728_p11), %s3097_s7, 2048, %s344_s18, [#allocation9], %s3082_s25, %s3082_s25, %s3083_s28  }
  0x4e   : > { %s3099_s24 = scalar_select %p2783_p6, 1, 0 }
  0x4f   : > { %p2241_p0 = scmp.lt.s32.totalorder %s2606_s16, 2  ;;  %s360_s26 = sand.u32 1, %s2602_s15  }
  0x50   : > { %s1811_s22 = sshll.u32 %s360_s26, 7  ;;  %s1932_s18 = sshll.u32 %s2606_s16, 11 }
  0x51   : > { %s2793_s25 = scalar_lea.hbm %s3069_s0, %s1932_s18  ;;  %s364_s23 = scalar_lea.vmem [#allocation2], %s1811_s22 }
  0x52   : > { %s372_s29 = sshll.u32 %s364_s23, 4  ;;  %p2797_p11 = pnand %p2241_p0, %p48_p13  ;;  %s2795_s29 = int_to_ptr.vmem [resolvable:$true] %s372_s29 }
  0x53   : > { %s2801_s1 = scalar_lea.sflag [#allocation3], %s360_s26  ;;  %s2476_s3 = scalar_lea.hbm %s2793_s25, 2048 }
  0x54   : > { %p2477_p5 = scmp.ne.s32.totalorder %s2793_s25, %s2476_s3  ;;  %p2478_p3 = pneg %p2797_p11 }
  0x55   : > { %s2481_s22 = scalar_lea.hbm %s3069_s0, 4096  ;;  %p2482_p7 = scmp.lt.s32.totalorder %s2793_s25, %s3069_s0 }
  0x56   : > { %p2479_p10 = pnand %p2478_p3, %p2477_p5  ;;  %p2483_p12 = scmp.lt.s32.totalorder %s2481_s22, %s2476_s3 }
  0x58   : > { %p2480_p4 = pneg %p2479_p10  ;;  %p2484_p1 = por %p2483_p12, %p2482_p7 }
  0x5a   : > { %p2485_p9 = pnand %p2484_p1, %p2480_p4 }
  0x5c   : > { %2488 = shalt.err (!%p2485_p9)
}
  0x5d   : > { %s2489_s26 = scalar_lea.vmem %s2795_s29, 2048  ;;  %s2616_s5 = smov [#allocation2]  }
  0x5e   : > { %p2490_p13 = scmp.ne.s32.totalorder %s2795_s29, %s2489_s26  ;;  %s2494_s7 = sshll.u32 %s2616_s5, 4  ;;  %s2495_s7 = int_to_ptr.vmem [resolvable:$false] %s2494_s7 }
  0x5f   : > { %s2496_s18 = scalar_lea.vmem %s2495_s7, 4096  ;;  %p2497_p5 = scmp.lt.s32.totalorder %s2795_s29, %s2495_s7 }
  0x60   : > { %p2492_p2 = pnand %p2490_p13, %p2478_p3  ;;  %p2498_p10 = scmp.lt.s32.totalorder %s2496_s18, %s2489_s26 }
  0x62   : > { %p2493_p0 = pneg %p2492_p2  ;;  %p2499_p6 = por %p2498_p10, %p2497_p5 }
  0x64   : > { %p2500_p8 = pnand %p2499_p6, %p2493_p0 }
  0x66   : > { %2503 = shalt.err (!%p2500_p8)
}
  0x67   : > { %s3101_s3 = smov 8   ;;  %s3102_s30 = smov 128  }
  0x68   : > { %2229 = dma.hbm_to_vmem [thread:$0]  (!%p2797_p11), %s2793_s25, 2048, %s2795_s29, %s2801_s1, %s3102_s30, %s3102_s30, %s3101_s3  }
  0x69   : > { %p3103_p3 = scmp.ne.s32.totalorder %s3092_s21, 0 }
  0x6a   : > { %s2828_s5 = sand.u32 (!%p3103_p3), 1, %s2598_s14   ;;  %p3104_p8 = scmp.ne.s32.totalorder (!%p3103_p3), %s3090_s19, 0 }
  0x6b   : > { %384 = sbr.rel (%p3103_p3) target bundleno = 1053 (0x41d), region = 56  ;;  %s1816_s7 = sshll.u32 (!%p3103_p3), %s2828_s5, 7 }
  0x6c   : > { %s387_s22 = scalar_lea.sflag (!%p3103_p3), [#allocation3], %s2828_s5  ;;  %s2834_s28 = scalar_lea.vmem (!%p3103_p3), [#allocation2], %s1816_s7 }
  0x70   : > { %2573 = dma.done.wait (%p3104_p8), %s387_s22, 2048  }
  0x71   : > { %2575 = vsyncadd (%p3104_p8), %s387_s22, 4294965248  ;;  %p3105_p6 = scmp.eq.s32.totalorder %s2700_s17, 0 }
  0x73   : > { %2577 = dma.done.wait (%p3105_p6), [#allocation6], 3072   ;;  %p3106_p11 = pmov %p3105_p6 }
  0x74   : > { %p3107_p4 = pmov %p3105_p6 }
  0x75   : > { %2579 = vsyncadd (%p3106_p11), [#allocation6], 4294964224 }
  0x76   : > { %2581 = dma.done.wait (%p3107_p4), [#allocation9], 3072   ;;  %p3108_p7 = pmov %p3107_p4 }
  0x77   : > { %v2292_v0 = vld [vmem:[#allocation5 + $0x78] sm:$0xff]   ;;  %v2294_v2 = vld [vmem:[#allocation5 + $0x70] sm:$0xff]   ;;  %v2296_v4 = vld [vmem:[#allocation5 + $0x68] sm:$0xff]   ;;  %s1822_s29 = sshll.u32 %s2828_s5, 6  ;;  %s1967_s3 = sshll.u32 %s2700_s17, 10 }
  0x78   : > { %2583 = vsyncadd (%p3108_p7), [#allocation9], 4294964224  ;;  %v2293_v1 = vld [vmem:[#allocation5 + $0x38] sm:$0xff]   ;;  %2015 = vmatprep.subr.bf16.mxu0 %v2292_v0  ;;  %2175 = vmatprep.subr.bf16.mxu1 %v2292_v0  ;;  %v2295_v3 = vld [vmem:[#allocation5 + $0x30] sm:$0xff]   ;;  %s2895_s11 = scalar_lea.vmem [#allocation12], %s1822_s29  ;;  %s1631_s1 = scalar_lea.sflag [#allocation13], %s2828_s5 }
  0x79   : > { %2016 = vmatpush3.bf16.msra.mxu0 %v2293_v1  ;;  %2183 = vmatpush3.bf16.msra.mxu1 %v2293_v1  ;;  %v2297_v5 = vld [vmem:[#allocation5 + $0x28] sm:$0xff]   ;;  %v2298_v6 = vld [vmem:[#allocation5 + $0x60] sm:$0xff]   ;;  %v2300_v8 = vld [vmem:[#allocation5 + $0x58] sm:$0xff]   ;;  %s1661_s18 = sshll.u32 %s2895_s11, 4  ;;  %p3109_p1 = scmp.ne.s32.totalorder %s3099_s24, 0  ;;  %s2929_s18 = int_to_ptr.vmem [resolvable:$true] %s1661_s18 }
  0x7a   : > { %2017 = vmatprep.subr.bf16.mxu0 %v2294_v2  ;;  %2176 = vmatprep.subr.bf16.mxu1 %v2294_v2  ;;  %v2299_v7 = vld [vmem:[#allocation5 + $0x20] sm:$0xff]   ;;  %v2301_v9 = vld [vmem:[#allocation5 + $0x18] sm:$0xff]   ;;  %v2302_v10 = vld [vmem:[#allocation5 + $0x50] sm:$0xff]   ;;  %s2504_s19 = scalar_lea.vmem %s2929_s18, 1024  ;;  %s2618_s21 = smov [#allocation12]  }
  0x7b   : > { %v2310_v11 = vld [vmem:[%s2834_s28 + $0x4] ss:$8 sps:$4 sm:$0xff]   ;;  %v2303_v12 = vld [vmem:[#allocation5 + $0x10] sm:$0xff]   ;;  %v2308_v18 = vld [vmem:[%s2834_s28] ss:$8 sps:$4 sm:$0xff]   ;;  %p2505_p12 = scmp.ne.s32.totalorder %s2929_s18, %s2504_s19  ;;  %s2508_s25 = sshll.u32 %s2618_s21, 4  ;;  %s2509_s25 = int_to_ptr.vmem [resolvable:$false] %s2508_s25 }
  0x7c   : > { %715 = vmatprep.mubr.bf16.mxu0 %v2310_v11  ;;  %v2304_v13 = vld [vmem:[#allocation5 + $0x48] sm:$0xff]   ;;  %v2306_v16 = vld [vmem:[#allocation5 + $0x40] sm:$0xff]   ;;  %v2311_v19 = vld [vmem:[%s2834_s28 + $0x14] ss:$8 sps:$4 sm:$0xff]   ;;  %s2510_s29 = scalar_lea.vmem %s2509_s25, 2048  ;;  %p2511_p2 = scmp.lt.s32.totalorder %s2929_s18, %s2509_s25 }
  0x7d   : > { %2018 = vmatpush3.bf16.msra.mxu0 %v2295_v3  ;;  %2184 = vmatpush3.bf16.msra.mxu1 %v2295_v3  ;;  %v2318_v14 = vld [vmem:[%s2834_s28 + $0x44] ss:$8 sps:$4 sm:$0xff]   ;;  %v2316_v20 = vld [vmem:[%s2834_s28 + $0x40] ss:$8 sps:$4 sm:$0xff]   ;;  %v2332_v21 = vld [vmem:[#allocation7 + $0x38] sm:$0xff]   ;;  %p2506_p9 = pnand %p2505_p12, %p3109_p1  ;;  %p2512_p0 = scmp.lt.s32.totalorder %s2510_s29, %s2504_s19 }
  0x7e   : > { %2019 = vmatprep.subr.bf16.mxu0 %v2296_v4  ;;  %2177 = vmatprep.subr.bf16.mxu1 %v2296_v4  ;;  %v2305_v15 = vld [vmem:[#allocation5 + $0x8] sm:$0xff]   ;;  %v2307_v17 = vld [vmem:[#allocation5] sm:$0xff]   ;;  %v2322_v22 = vld [vmem:[%s2834_s28 + $0x54] ss:$8 sps:$4 sm:$0xff]  }
  0x7f   : > { %747 = vmatprep.mubr.bf16.mxu1 %v2318_v14  ;;  %v2333_v23 = vld [vmem:[#allocation7 + $0x30] sm:$0xff]   ;;  %v2334_v24 = vld [vmem:[#allocation7 + $0x28] sm:$0xff]   ;;  %v2335_v35 = vld [vmem:[#allocation7 + $0x20] sm:$0xff]   ;;  %p2507_p13 = pneg %p2506_p9  ;;  %p2513_p5 = por %p2512_p0, %p2511_p2 }
  0x80   : > { %v2313_v25 = vld [vmem:[%s2834_s28 + $0x10] ss:$8 sps:$4 sm:$0xff]   ;;  %v2314_v26 = vld [vmem:[%s2834_s28 + $0x24] ss:$8 sps:$4 sm:$0xff]   ;;  %v2319_v29 = vld [vmem:[%s2834_s28 + $0x20] ss:$8 sps:$4 sm:$0xff]  }
  0x81   : > { %2020 = vmatpush3.bf16.msra.mxu0 %v2297_v5  ;;  %2185 = vmatpush3.bf16.msra.mxu1 %v2297_v5  ;;  %v2325_v27 = vld [vmem:[%s2834_s28 + $0x50] ss:$8 sps:$4 sm:$0xff]   ;;  %v2326_v28 = vld [vmem:[%s2834_s28 + $0x64] ss:$8 sps:$4 sm:$0xff]   ;;  %v2320_v30 = vld [vmem:[%s2834_s28 + $0x34] ss:$8 sps:$4 sm:$0xff]   ;;  %p2514_p10 = pnand %p2513_p5, %p2507_p13 }
  0x82   : > { %2021 = vmatprep.subr.bf16.mxu0 %v2298_v6  ;;  %2178 = vmatprep.subr.bf16.mxu1 %v2298_v6  ;;  %v2328_v31 = vld [vmem:[%s2834_s28 + $0x60] ss:$8 sps:$4 sm:$0xff]   ;;  %v2329_v32 = vld [vmem:[%s2834_s28 + $0x74] ss:$8 sps:$4 sm:$0xff]   ;;  %v2324_v33 = vld [vmem:[%s2834_s28 + $0x30] ss:$8 sps:$4 sm:$0xff]  }
  0x83   : > { %v2331_v34 = vld [vmem:[%s2834_s28 + $0x70] ss:$8 sps:$4 sm:$0xff]   ;;  %v2338_v38 = vld [vmem:[#allocation7 + $0x8] sm:$0xff]   ;;  %v2339_v39 = vld [vmem:[#allocation7] sm:$0xff]   ;;  %s2935_s28 = scalar_lea.hbm %s3079_s10, %s1967_s3 }
  0x84   : > { %v2336_v36 = vld [vmem:[#allocation7 + $0x18] sm:$0xff]   ;;  %v2337_v37 = vld [vmem:[#allocation7 + $0x10] sm:$0xff]   ;;  %v2867_v46 = vld [vmem:[%s3071_s2] ss:$0 sm:$0xff] }
  0x85   : > { %2022 = vmatpush3.bf16.msra.mxu0 %v2299_v7  ;;  %2186 = vmatpush3.bf16.msra.mxu1 %v2299_v7  ;;  %v2340_v40 = vld [vmem:[#allocation8 + $0x38] sm:$0xff]  }
  0x86   : > { %2023 = vmatprep.subr.bf16.mxu0 %v2300_v8  ;;  %2179 = vmatprep.subr.bf16.mxu1 %v2300_v8 }
  0x89   : > { %2024 = vmatpush3.bf16.msra.mxu0 %v2301_v9  ;;  %2187 = vmatpush3.bf16.msra.mxu1 %v2301_v9 }
  0x8a   : > { %2025 = vmatprep.subr.bf16.mxu0 %v2302_v10  ;;  %2180 = vmatprep.subr.bf16.mxu1 %v2302_v10 }
  0x8d   : > { %2026 = vmatpush3.bf16.msra.mxu0 %v2303_v12  ;;  %2188 = vmatpush3.bf16.msra.mxu1 %v2303_v12 }
  0x8e   : > { %2027 = vmatprep.subr.bf16.mxu0 %v2304_v13  ;;  %2181 = vmatprep.subr.bf16.mxu1 %v2304_v13 }
  0x91   : > { %2028 = vmatpush3.bf16.msra.mxu0 %v2305_v15  ;;  %2189 = vmatpush3.bf16.msra.mxu1 %v2305_v15  ;;  %v2341_v15 = vld [vmem:[#allocation8 + $0x30] sm:$0xff]  }
  0x92   : > { %2029 = vmatprep.subr.bf16.mxu0 %v2306_v16  ;;  %2182 = vmatprep.subr.bf16.mxu1 %v2306_v16 }
  0x95   : > { %2030 = vmatpush3.bf16.msra.mxu0 %v2307_v17  ;;  %2190 = vmatpush3.bf16.msra.mxu1 %v2307_v17 }
  0x96   : > { %2111 = vmatprep.subr.bf16.mxu1 %v2332_v21 }
  0x98   : > { %716 = vmatmul.mubr.bf16.vlgmr.msra.gmra.mxu0 %v2308_v18  ;;  %748 = vmatmul.mubr.bf16.vlgmr.msra.gmra.mxu1 %v2316_v20 }
  0x99   : > { %723 = vmatprep.mubr.bf16.mxu0 %v2311_v19  ;;  %755 = vmatprep.mubr.bf16.mxu1 %v2322_v22 }
  0x9a   : > { %2112 = vmatpush3.bf16.msra.mxu1 %v2332_v21 }
  0x9b   : > { %2113 = vmatprep.subr.bf16.mxu1 %v2333_v23 }
  0x9e   : > { %2114 = vmatpush3.bf16.msra.mxu1 %v2333_v23 }
  0x9f   : > { %2115 = vmatprep.subr.bf16.mxu1 %v2334_v24 }
  0xa0   : > { %724 = vmatmul.mubr.bf16.gmra.mxu0 %v2313_v25  ;;  %756 = vmatmul.mubr.bf16.gmra.mxu1 %v2325_v27  ;;  %v2342_v25 = vld [vmem:[#allocation8 + $0x28] sm:$0xff]  }
  0xa1   : > { %731 = vmatprep.mubr.bf16.mxu0 %v2314_v26  ;;  %763 = vmatprep.mubr.bf16.mxu1 %v2326_v28 }
  0xa2   : > { %2116 = vmatpush3.bf16.msra.mxu1 %v2334_v24 }
  0xa3   : > { %2117 = vmatprep.subr.bf16.mxu1 %v2335_v35 }
  0xa6   : > { %2118 = vmatpush3.bf16.msra.mxu1 %v2335_v35  ;;  %v2343_v35 = vld [vmem:[#allocation8 + $0x20] sm:$0xff]  }
  0xa7   : > { %2119 = vmatprep.subr.bf16.mxu1 %v2336_v36 }
  0xa8   : > { %732 = vmatmul.mubr.bf16.gmra.mxu0 %v2319_v29  ;;  %764 = vmatmul.mubr.bf16.gmra.mxu1 %v2328_v31 }
  0xa9   : > { %739 = vmatprep.mubr.bf16.mxu0 %v2320_v30  ;;  %771 = vmatprep.mubr.bf16.mxu1 %v2329_v32 }
  0xaa   : > { %2120 = vmatpush3.bf16.msra.mxu1 %v2336_v36 }
  0xab   : > { %2121 = vmatprep.subr.bf16.mxu1 %v2337_v37 }
  0xae   : > { %2122 = vmatpush3.bf16.msra.mxu1 %v2337_v37 }
  0xaf   : > { %2123 = vmatprep.subr.bf16.mxu1 %v2338_v38 }
  0xb0   : > { %740 = vmatmul.mubr.bf16.gmra.mxu0 %v2324_v33  ;;  %772 = vmatmul.mubr.bf16.gmra.mxu1 %v2331_v34 }
  0xb2   : > { %2124 = vmatpush3.bf16.msra.mxu1 %v2338_v38 }
  0xb3   : > { %2125 = vmatprep.subr.bf16.mxu1 %v2339_v39 }
  0xb6   : > { %2126 = vmatpush3.bf16.msra.mxu1 %v2339_v39 }
  0xb7   : > { %2143 = vmatprep.subr.bf16.mxu1 %v2340_v40 }
 0x158   : > { %v2031_v41 = vpop.f32.mrf.mxu0  ;;  %v2055_v42 = vpop.f32.mrf.mxu1 }
 0x15a   : > { %v2032_v43 = vpop.f32.mrf.mxu0  ;;  %v2056_v45 = vpop.f32.mrf.mxu1 }
 0x15b   : > { %v2033_v44 = vadd.f32 %v2032_v43, %v2031_v41  ;;  %v2057_v20 = vadd.f32 %v2056_v45, %v2055_v42 }
 0x15c   : > { %v2034_v47 = vpop.f32.mrf.mxu0  ;;  %v2058_v48 = vpop.f32.mrf.mxu1 }
 0x15d   : > { %v718_v50 = vadd.f32 %v2033_v44, %v2867_v46  ;;  %v750_v30 = vadd.f32 %v2057_v20, %v2867_v46  ;;  %v2888_v20 = vld [vmem:[%s3073_s4] ss:$0 sm:$0xff] }
 0x15e   : > { %v2035_v49 = vpop.f32.mrf.mxu0  ;;  %v2059_v52 = vpop.f32.mrf.mxu1 }
 0x15f   : > { %v2036_v51 = vadd.f32 %v2035_v49, %v2034_v47  ;;  %v780_v57 = vmax.f32 %v718_v50, 0.0  ;;  %v2060_v21 = vadd.f32 %v2059_v52, %v2058_v48  ;;  %v788_v41 = vmax.f32 %v750_v30, 0.0  ;;  %v2344_v48 = vld [vmem:[#allocation8 + $0x18] sm:$0xff]  }
 0x160   : > { %v2037_v53 = vpop.f32.mrf.mxu0  ;;  %v2061_v55 = vpop.f32.mrf.mxu1 }
 0x161   : > { %v721_v54 = vadd.f32 %v2036_v51, %v2867_v46  ;;  %v753_v31 = vadd.f32 %v2060_v21, %v2867_v46 }
 0x162   : > { %v2038_v56 = vpop.f32.mrf.mxu0  ;;  %v2062_v60 = vpop.f32.mrf.mxu1 }
 0x163   : > { %v781_v58 = vmax.f32 %v721_v54, 0.0  ;;  %v2039_v59 = vadd.f32 %v2038_v56, %v2037_v53  ;;  %v2063_v38 = vadd.f32 %v2062_v60, %v2061_v55  ;;  %v789_v42 = vmax.f32 %v753_v31, 0.0 }
 0x164   : > { %v2040_v61 = vpop.f32.mrf.mxu0  ;;  %v2064_v63 = vpop.f32.mrf.mxu1 }
 0x165   : > { %v796_v62 = vpack.c.bf16 %v781_v58, %v780_v57  ;;  %v726_v1 = vadd.f32 %v2039_v59, %v2867_v46  ;;  %v758_v50 = vadd.f32 %v2063_v38, %v2867_v46  ;;  %v800_v55 = vpack.c.bf16 %v789_v42, %v788_v41 }
 0x166   : > { %v2041_v0 = vpop.f32.mrf.mxu0  ;;  %v2065_v3 = vpop.f32.mrf.mxu1 }
 0x167   : > { %v2042_v2 = vadd.f32 %v2041_v0, %v2040_v61  ;;  %2127 = vmatprep.mubr.bf16.mxu1 %v796_v62  ;;  %v782_v8 = vmax.f32 %v726_v1, 0.0  ;;  %v790_v58 = vmax.f32 %v758_v50, 0.0 }
 0x168   : > { %v2043_v4 = vpop.f32.mrf.mxu0  ;;  %v2067_v6 = vpop.f32.mrf.mxu1 }
 0x169   : > { %v729_v5 = vadd.f32 %v2042_v2, %v2867_v46 }
 0x16a   : > { %v2044_v7 = vpop.f32.mrf.mxu0  ;;  %v2068_v11 = vpop.f32.mrf.mxu1 }
 0x16b   : > { %v783_v9 = vmax.f32 %v729_v5, 0.0  ;;  %v2045_v10 = vadd.f32 %v2044_v7, %v2043_v4  ;;  %v2069_v43 = vadd.f32 %v2068_v11, %v2067_v6  ;;  %v2345_v7 = vld [vmem:[#allocation8 + $0x10] sm:$0xff]  }
 0x16c   : > { %v2046_v12 = vpop.f32.mrf.mxu0  ;;  %v2070_v14 = vpop.f32.mrf.mxu1  ;;  %v2350_v11 = vld [vmem:[#allocation10 + $0x74] ss:$8 sps:$4 sm:$0xff]  }
 0x16d   : > { %v797_v13 = vpack.c.bf16 %v783_v9, %v782_v8  ;;  %v734_v17 = vadd.f32 %v2045_v10, %v2867_v46  ;;  %v766_v53 = vadd.f32 %v2069_v43, %v2867_v46  ;;  %v2346_v8 = vld [vmem:[#allocation8 + $0x8] sm:$0xff]   ;;  %v2347_v9 = vld [vmem:[#allocation8] sm:$0xff]   ;;  %v2348_v10 = vld [vmem:[#allocation10 + $0x70] ss:$8 sps:$4 sm:$0xff]   ;;  %1368 = vmatprep.subr.bf16.mxu0 %v2350_v11 }
 0x16e   : > { %v2047_v16 = vpop.f32.mrf.mxu0  ;;  %v2071_v19 = vpop.f32.mrf.mxu1  ;;  %1369 = vmatpush1.bf16.msra.mxu0 %v2348_v10 }
 0x16f   : > { %v2048_v18 = vadd.f32 %v2047_v16, %v2046_v12  ;;  %2128 = vmatmul.mubr.bf16.vlgmr.msra.gmra.mxu1 %v797_v13  ;;  %v784_v27 = vmax.f32 %v734_v17, 0.0  ;;  %v2072_v44 = vadd.f32 %v2071_v19, %v2070_v14  ;;  %v792_v62 = vmax.f32 %v766_v53, 0.0  ;;  %v2351_v12 = vld [vmem:[#allocation10 + $0x60] ss:$8 sps:$4 sm:$0xff]   ;;  %v2356_v13 = vld [vmem:[#allocation10 + $0x54] ss:$8 sps:$4 sm:$0xff]  }
 0x170   : > { %v2049_v22 = vpop.f32.mrf.mxu0  ;;  %2144 = vmatpush3.bf16.msra.mxu1 %v2340_v40  ;;  %v2073_v24 = vpop.f32.mrf.mxu1  ;;  %v2066_v40 = vadd.f32 %v2065_v3, %v2064_v63  ;;  %v2354_v14 = vld [vmem:[#allocation10 + $0x50] ss:$8 sps:$4 sm:$0xff]   ;;  %v2357_v16 = vld [vmem:[#allocation10 + $0x40] ss:$8 sps:$4 sm:$0xff]   ;;  %v2362_v17 = vld [vmem:[#allocation10 + $0x34] ss:$8 sps:$4 sm:$0xff]  }
 0x171   : > { %v737_v23 = vadd.f32 %v2048_v18, %v2867_v46  ;;  %2145 = vmatprep.subr.bf16.mxu1 %v2341_v15  ;;  %v769_v54 = vadd.f32 %v2072_v44, %v2867_v46  ;;  %v2360_v18 = vld [vmem:[#allocation10 + $0x30] ss:$8 sps:$4 sm:$0xff]  }
 0x172   : > { %v2050_v26 = vpop.f32.mrf.mxu0  ;;  %v2074_v33 = vpop.f32.mrf.mxu1  ;;  %v761_v52 = vadd.f32 %v2066_v40, %v2867_v46 }
 0x173   : > { %v785_v28 = vmax.f32 %v737_v23, 0.0  ;;  %v2051_v29 = vadd.f32 %v2050_v26, %v2049_v22  ;;  %v2075_v60 = vadd.f32 %v2074_v33, %v2073_v24  ;;  %v793_v63 = vmax.f32 %v769_v54, 0.0 }
 0x174   : > { %v2052_v32 = vpop.f32.mrf.mxu0  ;;  %2146 = vmatpush3.bf16.msra.mxu1 %v2341_v15  ;;  %v2076_v45 = vpop.f32.mrf.mxu1  ;;  %v791_v59 = vmax.f32 %v761_v52, 0.0  ;;  %v2359_v15 = vld [vmem:[#allocation10 + $0x44] ss:$8 sps:$4 sm:$0xff]  }
 0x175   : > { %v798_v34 = vpack.c.bf16 %v785_v28, %v784_v27  ;;  %2147 = vmatprep.subr.bf16.mxu1 %v2342_v25  ;;  %v742_v37 = vadd.f32 %v2051_v29, %v2867_v46  ;;  %v774_v0 = vadd.f32 %v2075_v60, %v2867_v46  ;;  %v802_v3 = vpack.c.bf16 %v793_v63, %v792_v62 }
 0x176   : > { %v2053_v36 = vpop.f32.mrf.mxu0  ;;  %v2077_v56 = vpop.f32.mrf.mxu1  ;;  %v801_v2 = vpack.c.bf16 %v791_v59, %v790_v58 }
 0x177   : > { %v2054_v39 = vadd.f32 %v2053_v36, %v2052_v32  ;;  %2131 = vmatprep.mubr.bf16.mxu1 %v798_v34  ;;  %v786_v49 = vmax.f32 %v742_v37, 0.0  ;;  %v2078_v61 = vadd.f32 %v2077_v56, %v2076_v45  ;;  %v794_v4 = vmax.f32 %v774_v0, 0.0 }
 0x178   : > { %2148 = vmatpush3.bf16.msra.mxu1 %v2342_v25 }
 0x179   : > { %v745_v47 = vadd.f32 %v2054_v39, %v2867_v46  ;;  %2149 = vmatprep.subr.bf16.mxu1 %v2343_v35  ;;  %v777_v1 = vadd.f32 %v2078_v61, %v2867_v46  ;;  %v2353_v46 = vld [vmem:[#allocation10 + $0x64] ss:$8 sps:$4 sm:$0xff]  }
 0x17a   : > { %1370 = vmatprep.subr.bf16.mxu0 %v2353_v46 }
 0x17b   : > { %v787_v51 = vmax.f32 %v745_v47, 0.0  ;;  %v795_v5 = vmax.f32 %v777_v1, 0.0  ;;  %1371 = vmatpush1.bf16.msra.mxu0 %v2351_v12  ;;  %v2365_v12 = vld [vmem:[#allocation10 + $0x24] ss:$8 sps:$4 sm:$0xff]  }
 0x17c   : > { %2150 = vmatpush3.bf16.msra.mxu1 %v2343_v35  ;;  %1372 = vmatprep.subr.bf16.mxu0 %v2356_v13  ;;  %v2363_v13 = vld [vmem:[#allocation10 + $0x20] ss:$8 sps:$4 sm:$0xff]  }
 0x17d   : > { %v799_v57 = vpack.c.bf16 %v787_v51, %v786_v49  ;;  %2151 = vmatprep.subr.bf16.mxu1 %v2344_v48  ;;  %v803_v6 = vpack.c.bf16 %v795_v5, %v794_v4 }
 0x17f   : > { %2132 = vmatmul.mubr.bf16.gmra.mxu1 %v799_v57  ;;  %1373 = vmatpush1.bf16.msra.mxu0 %v2354_v14  ;;  %v2368_v14 = vld [vmem:[#allocation10 + $0x14] ss:$8 sps:$4 sm:$0xff]  }
 0x180   : > { %2135 = vmatprep.mubr.bf16.mxu1 %v800_v55  ;;  %2152 = vmatpush3.bf16.msra.mxu1 %v2344_v48 }
 0x181   : > { %2153 = vmatprep.subr.bf16.mxu1 %v2345_v7  ;;  %1374 = vmatprep.subr.bf16.mxu0 %v2359_v15  ;;  %v2366_v15 = vld [vmem:[#allocation10 + $0x10] ss:$8 sps:$4 sm:$0xff]  }
 0x183   : > { %1375 = vmatpush1.bf16.msra.mxu0 %v2357_v16  ;;  %v2371_v16 = vld [vmem:[#allocation10 + $0x4] ss:$8 sps:$4 sm:$0xff]  }
 0x184   : > { %2154 = vmatpush3.bf16.msra.mxu1 %v2345_v7  ;;  %1376 = vmatprep.subr.bf16.mxu0 %v2362_v17  ;;  %v2369_v17 = vld [vmem:[#allocation10] ss:$8 sps:$4 sm:$0xff]  }
 0x185   : > { %2155 = vmatprep.subr.bf16.mxu1 %v2346_v8 }
 0x187   : > { %2136 = vmatmul.mubr.bf16.gmra.mxu1 %v801_v2  ;;  %1377 = vmatpush1.bf16.msra.mxu0 %v2360_v18  ;;  %v2617_v18 = vmov 0  }
 0x188   : > { %2139 = vmatprep.mubr.bf16.mxu1 %v802_v3  ;;  %2156 = vmatpush3.bf16.msra.mxu1 %v2346_v8 }
 0x189   : > { %2157 = vmatprep.subr.bf16.mxu1 %v2347_v9  ;;  %1378 = vmatprep.subr.bf16.mxu0 %v2365_v12 }
 0x18a   : > { %1400 = vmatprep.mubr.bf16.mxu0 %v2617_v18 }
 0x18b   : > { %1379 = vmatpush1.bf16.msra.mxu0 %v2363_v13 }
 0x18c   : > { %2158 = vmatpush3.bf16.msra.mxu1 %v2347_v9  ;;  %1380 = vmatprep.subr.bf16.mxu0 %v2368_v14 }
 0x18f   : > { %2140 = vmatmul.mubr.bf16.gmra.mxu1 %v803_v6  ;;  %1381 = vmatpush1.bf16.msra.mxu0 %v2366_v15 }
 0x190   : > { %1382 = vmatprep.subr.bf16.mxu0 %v2371_v16 }
 0x193   : > { %1383 = vmatpush1.bf16.msra.mxu0 %v2369_v17 }
 0x22f   : > { %v2129_v19 = vpop.f32.mrf.mxu1 }
 0x230   : > { %v918_v22 = vadd.f32 %v2129_v19, %v2888_v20 }
 0x231   : > { %v909_v21 = vpop.f32.mrf.mxu1 }
 0x232   : > { %v910_v24 = vadd.f32 %v2888_v20, %v909_v21  ;;  %v974_v27 = vmax.f32 %v918_v22, 0.0  ;;  %v1881_v21 = vld [vmem:[%s3075_s6] ss:$0 sm:$0xff] }
 0x233   : > { %v2130_v23 = vpop.f32.mrf.mxu1 }
 0x234   : > { %v921_v25 = vadd.f32 %v2130_v23, %v2888_v20  ;;  %v972_v30 = vmax.f32 %v910_v24, 0.0 }
 0x235   : > { %v912_v26 = vpop.f32.mrf.mxu1 }
 0x236   : > { %v975_v28 = vmax.f32 %v921_v25, 0.0  ;;  %v913_v29 = vadd.f32 %v2888_v20, %v912_v26 }
 0x238   : > { %v989_v31 = vpack.c.bf16 %v975_v28, %v974_v27  ;;  %v973_v32 = vmax.f32 %v913_v29, 0.0 }
 0x23a   : > { %2008 = vst [vmem:[%s2895_s11 + $0x8] sm:$0xff] %v989_v31   ;;  %v988_v33 = vpack.c.bf16 %v973_v32, %v972_v30 }
 0x23c   : > { %1972 = vst [vmem:[%s2895_s11] sm:$0xff] %v988_v33   ;;  %2159 = vmatprep.mubr.bf16.mxu1 %v988_v33 }
 0x23d   : > { %2160 = vmatmul.mubr.bf16.vlgmr.msra.gmra.mxu1 %v989_v31 }
 0x23f   : > { %v2133_v34 = vpop.f32.mrf.mxu1 }
 0x240   : > { %v934_v36 = vadd.f32 %v2133_v34, %v2888_v20 }
 0x241   : > { %v925_v35 = vpop.f32.mrf.mxu1 }
 0x242   : > { %v926_v38 = vadd.f32 %v2888_v20, %v925_v35  ;;  %v978_v41 = vmax.f32 %v934_v36, 0.0 }
 0x243   : > { %v2134_v37 = vpop.f32.mrf.mxu1 }
 0x244   : > { %v937_v39 = vadd.f32 %v2134_v37, %v2888_v20  ;;  %v976_v45 = vmax.f32 %v926_v38, 0.0 }
 0x245   : > { %v928_v40 = vpop.f32.mrf.mxu1 }
 0x246   : > { %v979_v42 = vmax.f32 %v937_v39, 0.0  ;;  %v929_v43 = vadd.f32 %v2888_v20, %v928_v40 }
 0x247   : > { %v2137_v44 = vpop.f32.mrf.mxu1 }
 0x248   : > { %v991_v47 = vpack.c.bf16 %v979_v42, %v978_v41  ;;  %v977_v48 = vmax.f32 %v929_v43, 0.0  ;;  %v950_v51 = vadd.f32 %v2137_v44, %v2888_v20 }
 0x249   : > { %v941_v49 = vpop.f32.mrf.mxu1 }
 0x24a   : > { %2010 = vst [vmem:[%s2895_s11 + $0x18] sm:$0xff] %v991_v47   ;;  %v990_v50 = vpack.c.bf16 %v977_v48, %v976_v45  ;;  %v942_v53 = vadd.f32 %v2888_v20, %v941_v49  ;;  %v982_v56 = vmax.f32 %v950_v51, 0.0 }
 0x24b   : > { %v2138_v52 = vpop.f32.mrf.mxu1 }
 0x24c   : > { %2009 = vst [vmem:[%s2895_s11 + $0x10] sm:$0xff] %v990_v50   ;;  %v953_v54 = vadd.f32 %v2138_v52, %v2888_v20  ;;  %2163 = vmatprep.mubr.bf16.mxu1 %v990_v50  ;;  %v980_v60 = vmax.f32 %v942_v53, 0.0 }
 0x24d   : > { %v944_v55 = vpop.f32.mrf.mxu1  ;;  %2164 = vmatmul.mubr.bf16.gmra.mxu1 %v991_v47 }
 0x24e   : > { %v983_v57 = vmax.f32 %v953_v54, 0.0  ;;  %v945_v58 = vadd.f32 %v2888_v20, %v944_v55 }
 0x24f   : > { %v2141_v59 = vpop.f32.mrf.mxu1 }
 0x250   : > { %v993_v61 = vpack.c.bf16 %v983_v57, %v982_v56  ;;  %v981_v62 = vmax.f32 %v945_v58, 0.0  ;;  %v966_v63 = vadd.f32 %v2141_v59, %v2888_v20 }
 0x251   : > { %v957_v0 = vpop.f32.mrf.mxu1 }
 0x252   : > { %2012 = vst [vmem:[%s2895_s11 + $0x28] sm:$0xff] %v993_v61   ;;  %v992_v1 = vpack.c.bf16 %v981_v62, %v980_v60  ;;  %v958_v2 = vadd.f32 %v2888_v20, %v957_v0  ;;  %v986_v4 = vmax.f32 %v966_v63, 0.0 }
 0x253   : > { %v2142_v3 = vpop.f32.mrf.mxu1 }
 0x254   : > { %2011 = vst [vmem:[%s2895_s11 + $0x20] sm:$0xff] %v992_v1   ;;  %v969_v5 = vadd.f32 %v2142_v3, %v2888_v20  ;;  %2167 = vmatprep.mubr.bf16.mxu1 %v992_v1  ;;  %v984_v7 = vmax.f32 %v958_v2, 0.0 }
 0x255   : > { %v960_v6 = vpop.f32.mrf.mxu1  ;;  %2168 = vmatmul.mubr.bf16.gmra.mxu1 %v993_v61 }
 0x256   : > { %v987_v8 = vmax.f32 %v969_v5, 0.0  ;;  %v961_v9 = vadd.f32 %v2888_v20, %v960_v6 }
 0x258   : > { %v995_v10 = vpack.c.bf16 %v987_v8, %v986_v4  ;;  %v985_v11 = vmax.f32 %v961_v9, 0.0 }
 0x25a   : > { %2014 = vst [vmem:[%s2895_s11 + $0x38] sm:$0xff] %v995_v10   ;;  %v994_v46 = vpack.c.bf16 %v985_v11, %v984_v7 }
 0x25c   : > { %2013 = vst [vmem:[%s2895_s11 + $0x30] sm:$0xff] %v994_v46   ;;  %2171 = vmatprep.mubr.bf16.mxu1 %v994_v46 }
 0x25d   : > { %2172 = vmatmul.mubr.bf16.gmra.mxu1 %v995_v10 }
 0x2fd   : > { %v2161_v19 = vpop.f32.mrf.mxu1 }
 0x2fe   : > { %v1182_v30 = vadd.f32 %v2161_v19, %v1881_v21 }
 0x2ff   : > { %v1173_v20 = vpop.f32.mrf.mxu1 }
 0x300   : > { %v1174_v23 = vadd.f32 %v1881_v21, %v1173_v20  ;;  %v1238_v33 = vmax.f32 %v1182_v30, 0.0 }
 0x301   : > { %v2162_v22 = vpop.f32.mrf.mxu1 }
 0x302   : > { %v1236_v26 = vmax.f32 %v1174_v23, 0.0  ;;  %v1185_v28 = vadd.f32 %v2162_v22, %v1881_v21 }
 0x303   : > { %v1176_v24 = vpop.f32.mrf.mxu1 }
 0x304   : > { %v1177_v25 = vadd.f32 %v1881_v21, %v1176_v24  ;;  %v1239_v31 = vmax.f32 %v1185_v28, 0.0 }
 0x306   : > { %v1237_v27 = vmax.f32 %v1177_v25, 0.0  ;;  %v1253_v35 = vpack.c.bf16 %v1239_v31, %v1238_v33 }
 0x308   : > { %v1252_v29 = vpack.c.bf16 %v1237_v27, %v1236_v26 }
 0x30a   : > { %1401 = vmatmul.mubr.bf16.vlgmr.msra.gmra.mxu0 %v1252_v29 }
 0x30b   : > { %1410 = vmatprep.mubr.bf16.mxu0 %v2617_v18 }
 0x30d   : > { %v2165_v32 = vpop.f32.mrf.mxu1 }
 0x30e   : > { %v1198_v48 = vadd.f32 %v2165_v32, %v1881_v21 }
 0x30f   : > { %v1189_v34 = vpop.f32.mrf.mxu1 }
 0x310   : > { %v1190_v37 = vadd.f32 %v1881_v21, %v1189_v34  ;;  %v1242_v51 = vmax.f32 %v1198_v48, 0.0 }
 0x311   : > { %v2166_v36 = vpop.f32.mrf.mxu1 }
 0x312   : > { %1411 = vmatmul.mubr.bf16.gmra.mxu0 %v1253_v35  ;;  %v1240_v41 = vmax.f32 %v1190_v37, 0.0  ;;  %v1201_v44 = vadd.f32 %v2166_v36, %v1881_v21 }
 0x313   : > { %v1192_v38 = vpop.f32.mrf.mxu1  ;;  %1420 = vmatprep.mubr.bf16.mxu0 %v2617_v18 }
 0x314   : > { %v1193_v39 = vadd.f32 %v1881_v21, %v1192_v38  ;;  %v1243_v49 = vmax.f32 %v1201_v44, 0.0 }
 0x315   : > { %v2169_v40 = vpop.f32.mrf.mxu1 }
 0x316   : > { %v1241_v42 = vmax.f32 %v1193_v39, 0.0  ;;  %v1255_v52 = vpack.c.bf16 %v1243_v49, %v1242_v51  ;;  %v1214_v62 = vadd.f32 %v2169_v40, %v1881_v21 }
 0x317   : > { %v1205_v43 = vpop.f32.mrf.mxu1 }
 0x318   : > { %v1254_v45 = vpack.c.bf16 %v1241_v42, %v1240_v41  ;;  %v1206_v55 = vadd.f32 %v1881_v21, %v1205_v43  ;;  %v1246_v1 = vmax.f32 %v1214_v62, 0.0 }
 0x319   : > { %v2170_v47 = vpop.f32.mrf.mxu1 }
 0x31a   : > { %1421 = vmatmul.mubr.bf16.gmra.mxu0 %v1254_v45  ;;  %v1244_v58 = vmax.f32 %v1206_v55, 0.0  ;;  %v1217_v59 = vadd.f32 %v2170_v47, %v1881_v21 }
 0x31b   : > { %1430 = vmatprep.mubr.bf16.mxu0 %v2617_v18  ;;  %v1208_v50 = vpop.f32.mrf.mxu1 }
 0x31c   : > { %v1209_v53 = vadd.f32 %v1881_v21, %v1208_v50  ;;  %v1247_v63 = vmax.f32 %v1217_v59, 0.0 }
 0x31d   : > { %v2173_v54 = vpop.f32.mrf.mxu1 }
 0x31e   : > { %v1245_v56 = vmax.f32 %v1209_v53, 0.0  ;;  %v1257_v2 = vpack.c.bf16 %v1247_v63, %v1246_v1  ;;  %v1230_v7 = vadd.f32 %v2173_v54, %v1881_v21 }
 0x31f   : > { %v1221_v57 = vpop.f32.mrf.mxu1 }
 0x320   : > { %v1256_v60 = vpack.c.bf16 %v1245_v56, %v1244_v58  ;;  %v1222_v4 = vadd.f32 %v1881_v21, %v1221_v57  ;;  %v1250_v10 = vmax.f32 %v1230_v7, 0.0 }
 0x321   : > { %v2174_v61 = vpop.f32.mrf.mxu1 }
 0x322   : > { %1431 = vmatmul.mubr.bf16.gmra.mxu0 %v1255_v52  ;;  %v1248_v6 = vmax.f32 %v1222_v4, 0.0  ;;  %v1233_v8 = vadd.f32 %v2174_v61, %v1881_v21 }
 0x323   : > { %1440 = vmatprep.mubr.bf16.mxu0 %v2617_v18  ;;  %v1224_v0 = vpop.f32.mrf.mxu1 }
 0x324   : > { %v1225_v3 = vadd.f32 %v1881_v21, %v1224_v0  ;;  %v1251_v11 = vmax.f32 %v1233_v8, 0.0 }
 0x326   : > { %v1249_v5 = vmax.f32 %v1225_v3, 0.0  ;;  %v1259_v46 = vpack.c.bf16 %v1251_v11, %v1250_v10 }
 0x328   : > { %v1258_v9 = vpack.c.bf16 %v1249_v5, %v1248_v6 }
 0x32a   : > { %1441 = vmatmul.mubr.bf16.gmra.mxu0 %v1256_v60 }
 0x32b   : > { %1450 = vmatprep.mubr.bf16.mxu0 %v2617_v18 }
 0x332   : > { %1451 = vmatmul.mubr.bf16.gmra.mxu0 %v1257_v2 }
 0x333   : > { %1460 = vmatprep.mubr.bf16.mxu0 %v2617_v18 }
 0x33a   : > { %1461 = vmatmul.mubr.bf16.gmra.mxu0 %v1258_v9 }
 0x33b   : > { %1470 = vmatprep.mubr.bf16.mxu0 %v2617_v18 }
 0x342   : > { %1471 = vmatmul.mubr.bf16.gmra.mxu0 %v1259_v46 }
 0x343   : > { %2517 = shalt.err (!%p2514_p10)
}
 0x344   : > { %s2518_s11 = scalar_lea.hbm %s2935_s28, 1024  ;;  %s2522_s3 = scalar_lea.hbm %s3079_s10, 2048 }
 0x345   : > { %p2519_p3 = scmp.ne.s32.totalorder %s2935_s28, %s2518_s11  ;;  %p2523_p11 = scmp.lt.s32.totalorder %s2935_s28, %s3079_s10 }
 0x346   : > { %p2524_p4 = scmp.lt.s32.totalorder %s2522_s3, %s2518_s11 }
 0x347   : > { %p2520_p8 = pnand %p2519_p3, %p3109_p1 }
 0x348   : > { %p2525_p7 = por %p2524_p4, %p2523_p11 }
 0x349   : > { %p2521_p6 = pneg %p2520_p8 }
 0x34b   : > { %p2526_p12 = pnand %p2525_p7, %p2521_p6 }
 0x34d   : > { %2529 = shalt.err (!%p2526_p12)
}
 0x34e   : > { %s2619_s19 = smov 64   ;;  %s2620_s21 = smov 4   ;;  %v1278_v12 = vlaneseq  ;;  %v1276_v15 = vld [vmem:[%s3077_s8] sm:$0x3] }
 0x34f   : > { %2210 = dma.vmem_to_hbm [thread:$0]  (%p3109_p1), %s2929_s18, 1024, %s2935_s28, %s1631_s1, %s2619_s19, %s2619_s19, %s2620_s21  }
 0x350   : > { %v1279_v13 = vshrl.u32 %v1278_v12, 7  ;;  %s2973_s18 = scalar_lea.vmem [#allocation11], %s1816_s7  ;;  %s1966_s7 = sshll.u32 %s2700_s17, 11 }
 0x351   : > { %s1645_s28 = sshll.u32 %s2973_s18, 4  ;;  %s3023_s23 = scalar_lea.hbm %s3078_s9, %s1966_s7  ;;  %s3025_s28 = int_to_ptr.vmem [resolvable:$true] %s1645_s28 }
 0x352   : > { %v1280_v14 = vsub.s32 0, %v1279_v13  ;;  %v1284_v16 = vsub.s32 1, %v1279_v13  ;;  %s1626_s26 = scalar_lea.sflag [#allocation4], %s2828_s5  ;;  %s2530_s3 = scalar_lea.vmem %s3025_s28, 2048 }
 0x353   : > { %p2531_p9 = scmp.ne.s32.totalorder %s3025_s28, %s2530_s3  ;;  %s2621_s17 = smov [#allocation11]  }
 0x354   : > { %v2963_v17 = vrot.slane %v1276_v15, %v1280_v14  ;;  %v2965_v18 = vrot.slane %v1276_v15, %v1284_v16  ;;  %s2534_s30 = sshll.u32 %s2621_s17, 4  ;;  %s2535_s30 = int_to_ptr.vmem [resolvable:$false] %s2534_s30 }
 0x355   : > { %p2532_p13 = pnand %p2531_p9, %p3109_p1  ;;  %s2536_s22 = scalar_lea.vmem %s2535_s30, 4096 }
 0x356   : > { %p2537_p0 = scmp.lt.s32.totalorder %s3025_s28, %s2535_s30  ;;  %p2538_p5 = scmp.lt.s32.totalorder %s2536_s22, %s2530_s3 }
 0x357   : > { %p2533_p2 = pneg %p2532_p13 }
 0x358   : > { %p2539_p10 = por %p2538_p5, %p2537_p0 }
 0x35a   : > { %p2540_p3 = pnand %p2539_p10, %p2533_p2 }
 0x3ca   : > { %v1402_v19 = vpop.f32.mrf.mxu0 }
 0x3cb   : > { %v1403_v20 = vadd.f32 %v1402_v19, %v2963_v17 }
 0x3cc   : > { %v1404_v21 = vpop.f32.mrf.mxu0 }
 0x3cd   : > { %v1405_v22 = vadd.f32 %v1404_v21, %v2965_v18  ;;  %v1481_v24 = vmax.f32 %v1403_v20, 0.0 }
 0x3ce   : > { %v1406_v23 = vpop.f32.mrf.mxu0 }
 0x3cf   : > { %v1482_v25 = vmax.f32 %v1405_v22, 0.0  ;;  %v1407_v26 = vadd.f32 %v1406_v23, %v2963_v17 }
 0x3d0   : > { %v1408_v27 = vpop.f32.mrf.mxu0 }
 0x3d1   : > { %v1949_v28 = vpack.c.bf16 %v1482_v25, %v1481_v24  ;;  %v1409_v29 = vadd.f32 %v1408_v27, %v2965_v18  ;;  %v1483_v31 = vmax.f32 %v1407_v26, 0.0 }
 0x3d2   : > { %v1412_v30 = vpop.f32.mrf.mxu0 }
 0x3d3   : > { %1609 = vst [vmem:[%s2973_s18] sm:$0xff] %v1949_v28  ;;  %v1484_v32 = vmax.f32 %v1409_v29, 0.0  ;;  %v1413_v33 = vadd.f32 %v1412_v30, %v2963_v17 }
 0x3d4   : > { %v1414_v34 = vpop.f32.mrf.mxu0 }
 0x3d5   : > { %v1950_v35 = vpack.c.bf16 %v1484_v32, %v1483_v31  ;;  %v1415_v36 = vadd.f32 %v1414_v34, %v2965_v18  ;;  %v1485_v38 = vmax.f32 %v1413_v33, 0.0 }
 0x3d6   : > { %v1416_v37 = vpop.f32.mrf.mxu0 }
 0x3d7   : > { %1610 = vst [vmem:[%s2973_s18 + $0x8] sm:$0xff] %v1950_v35  ;;  %v1486_v39 = vmax.f32 %v1415_v36, 0.0  ;;  %v1417_v40 = vadd.f32 %v1416_v37, %v2963_v17 }
 0x3d8   : > { %v1418_v41 = vpop.f32.mrf.mxu0 }
 0x3d9   : > { %v1951_v42 = vpack.c.bf16 %v1486_v39, %v1485_v38  ;;  %v1419_v43 = vadd.f32 %v1418_v41, %v2965_v18  ;;  %v1487_v45 = vmax.f32 %v1417_v40, 0.0 }
 0x3da   : > { %v1422_v44 = vpop.f32.mrf.mxu0 }
 0x3db   : > { %1611 = vst [vmem:[%s2973_s18 + $0x10] sm:$0xff] %v1951_v42  ;;  %v1488_v47 = vmax.f32 %v1419_v43, 0.0  ;;  %v1423_v48 = vadd.f32 %v1422_v44, %v2963_v17 }
 0x3dc   : > { %v1424_v49 = vpop.f32.mrf.mxu0 }
 0x3dd   : > { %v1952_v50 = vpack.c.bf16 %v1488_v47, %v1487_v45  ;;  %v1425_v51 = vadd.f32 %v1424_v49, %v2965_v18  ;;  %v1489_v53 = vmax.f32 %v1423_v48, 0.0 }
 0x3de   : > { %v1426_v52 = vpop.f32.mrf.mxu0 }
 0x3df   : > { %1612 = vst [vmem:[%s2973_s18 + $0x18] sm:$0xff] %v1952_v50  ;;  %v1490_v54 = vmax.f32 %v1425_v51, 0.0  ;;  %v1427_v55 = vadd.f32 %v1426_v52, %v2963_v17 }
 0x3e0   : > { %v1428_v56 = vpop.f32.mrf.mxu0 }
 0x3e1   : > { %v1953_v57 = vpack.c.bf16 %v1490_v54, %v1489_v53  ;;  %v1429_v58 = vadd.f32 %v1428_v56, %v2965_v18  ;;  %v1491_v60 = vmax.f32 %v1427_v55, 0.0 }
 0x3e2   : > { %v1432_v59 = vpop.f32.mrf.mxu0 }
 0x3e3   : > { %1613 = vst [vmem:[%s2973_s18 + $0x20] sm:$0xff] %v1953_v57  ;;  %v1492_v61 = vmax.f32 %v1429_v58, 0.0  ;;  %v1433_v62 = vadd.f32 %v1432_v59, %v2963_v17 }
 0x3e4   : > { %v1434_v63 = vpop.f32.mrf.mxu0 }
 0x3e5   : > { %v1954_v0 = vpack.c.bf16 %v1492_v61, %v1491_v60  ;;  %v1435_v1 = vadd.f32 %v1434_v63, %v2965_v18  ;;  %v1493_v3 = vmax.f32 %v1433_v62, 0.0 }
 0x3e6   : > { %v1436_v2 = vpop.f32.mrf.mxu0 }
 0x3e7   : > { %1614 = vst [vmem:[%s2973_s18 + $0x28] sm:$0xff] %v1954_v0  ;;  %v1494_v4 = vmax.f32 %v1435_v1, 0.0  ;;  %v1437_v5 = vadd.f32 %v1436_v2, %v2963_v17 }
 0x3e8   : > { %v1438_v6 = vpop.f32.mrf.mxu0 }
 0x3e9   : > { %v1955_v7 = vpack.c.bf16 %v1494_v4, %v1493_v3  ;;  %v1439_v8 = vadd.f32 %v1438_v6, %v2965_v18  ;;  %v1495_v10 = vmax.f32 %v1437_v5, 0.0 }
 0x3ea   : > { %v1442_v9 = vpop.f32.mrf.mxu0 }
 0x3eb   : > { %1615 = vst [vmem:[%s2973_s18 + $0x30] sm:$0xff] %v1955_v7  ;;  %v1496_v11 = vmax.f32 %v1439_v8, 0.0  ;;  %v1443_v46 = vadd.f32 %v1442_v9, %v2963_v17 }
 0x3ec   : > { %v1444_v12 = vpop.f32.mrf.mxu0 }
 0x3ed   : > { %v1956_v13 = vpack.c.bf16 %v1496_v11, %v1495_v10  ;;  %v1445_v14 = vadd.f32 %v1444_v12, %v2965_v18  ;;  %v1497_v16 = vmax.f32 %v1443_v46, 0.0 }
 0x3ee   : > { %v1446_v15 = vpop.f32.mrf.mxu0 }
 0x3ef   : > { %1616 = vst [vmem:[%s2973_s18 + $0x38] sm:$0xff] %v1956_v13  ;;  %v1498_v19 = vmax.f32 %v1445_v14, 0.0  ;;  %v1447_v20 = vadd.f32 %v1446_v15, %v2963_v17 }
 0x3f0   : > { %v1448_v21 = vpop.f32.mrf.mxu0 }
 0x3f1   : > { %v1957_v22 = vpack.c.bf16 %v1498_v19, %v1497_v16  ;;  %v1449_v23 = vadd.f32 %v1448_v21, %v2965_v18  ;;  %v1499_v25 = vmax.f32 %v1447_v20, 0.0 }
 0x3f2   : > { %v1452_v24 = vpop.f32.mrf.mxu0 }
 0x3f3   : > { %1617 = vst [vmem:[%s2973_s18 + $0x40] sm:$0xff] %v1957_v22  ;;  %v1500_v26 = vmax.f32 %v1449_v23, 0.0  ;;  %v1453_v27 = vadd.f32 %v1452_v24, %v2963_v17 }
 0x3f4   : > { %v1454_v28 = vpop.f32.mrf.mxu0 }
 0x3f5   : > { %v1958_v29 = vpack.c.bf16 %v1500_v26, %v1499_v25  ;;  %v1455_v30 = vadd.f32 %v1454_v28, %v2965_v18  ;;  %v1501_v32 = vmax.f32 %v1453_v27, 0.0 }
 0x3f6   : > { %v1456_v31 = vpop.f32.mrf.mxu0 }
 0x3f7   : > { %1618 = vst [vmem:[%s2973_s18 + $0x48] sm:$0xff] %v1958_v29  ;;  %v1502_v33 = vmax.f32 %v1455_v30, 0.0  ;;  %v1457_v34 = vadd.f32 %v1456_v31, %v2963_v17 }
 0x3f8   : > { %v1458_v35 = vpop.f32.mrf.mxu0 }
 0x3f9   : > { %v1959_v36 = vpack.c.bf16 %v1502_v33, %v1501_v32  ;;  %v1459_v37 = vadd.f32 %v1458_v35, %v2965_v18  ;;  %v1503_v39 = vmax.f32 %v1457_v34, 0.0 }
 0x3fa   : > { %v1462_v38 = vpop.f32.mrf.mxu0 }
 0x3fb   : > { %1619 = vst [vmem:[%s2973_s18 + $0x50] sm:$0xff] %v1959_v36  ;;  %v1504_v40 = vmax.f32 %v1459_v37, 0.0  ;;  %v1463_v41 = vadd.f32 %v1462_v38, %v2963_v17 }
 0x3fc   : > { %v1464_v42 = vpop.f32.mrf.mxu0 }
 0x3fd   : > { %v1960_v43 = vpack.c.bf16 %v1504_v40, %v1503_v39  ;;  %v1465_v44 = vadd.f32 %v1464_v42, %v2965_v18  ;;  %v1505_v47 = vmax.f32 %v1463_v41, 0.0 }
 0x3fe   : > { %v1466_v45 = vpop.f32.mrf.mxu0 }
 0x3ff   : > { %1620 = vst [vmem:[%s2973_s18 + $0x58] sm:$0xff] %v1960_v43  ;;  %v1506_v48 = vmax.f32 %v1465_v44, 0.0  ;;  %v1467_v49 = vadd.f32 %v1466_v45, %v2963_v17 }
 0x400   : > { %v1468_v50 = vpop.f32.mrf.mxu0 }
 0x401   : > { %v1961_v51 = vpack.c.bf16 %v1506_v48, %v1505_v47  ;;  %v1469_v52 = vadd.f32 %v1468_v50, %v2965_v18  ;;  %v1507_v54 = vmax.f32 %v1467_v49, 0.0 }
 0x402   : > { %v1472_v53 = vpop.f32.mrf.mxu0 }
 0x403   : > { %1621 = vst [vmem:[%s2973_s18 + $0x60] sm:$0xff] %v1961_v51  ;;  %v1508_v55 = vmax.f32 %v1469_v52, 0.0  ;;  %v1473_v56 = vadd.f32 %v1472_v53, %v2963_v17 }
 0x404   : > { %v1474_v57 = vpop.f32.mrf.mxu0 }
 0x405   : > { %v1962_v58 = vpack.c.bf16 %v1508_v55, %v1507_v54  ;;  %v1475_v59 = vadd.f32 %v1474_v57, %v2965_v18  ;;  %v1509_v61 = vmax.f32 %v1473_v56, 0.0 }
 0x406   : > { %v1476_v60 = vpop.f32.mrf.mxu0 }
 0x407   : > { %1622 = vst [vmem:[%s2973_s18 + $0x68] sm:$0xff] %v1962_v58  ;;  %v1510_v62 = vmax.f32 %v1475_v59, 0.0  ;;  %v1477_v63 = vadd.f32 %v1476_v60, %v2963_v17 }
 0x408   : > { %v1478_v0 = vpop.f32.mrf.mxu0 }
 0x409   : > { %v1963_v1 = vpack.c.bf16 %v1510_v62, %v1509_v61  ;;  %v1479_v2 = vadd.f32 %v1478_v0, %v2965_v18  ;;  %v1511_v3 = vmax.f32 %v1477_v63, 0.0 }
 0x40b   : > { %1623 = vst [vmem:[%s2973_s18 + $0x70] sm:$0xff] %v1963_v1  ;;  %v1512_v4 = vmax.f32 %v1479_v2, 0.0 }
 0x40d   : > { %v1964_v17 = vpack.c.bf16 %v1512_v4, %v1511_v3 }
 0x40f   : > { %1624 = vst [vmem:[%s2973_s18 + $0x78] sm:$0xff] %v1964_v17 }
 0x410   : > { %2543 = shalt.err (!%p2540_p3)
}
 0x411   : > { %s2544_s19 = scalar_lea.hbm %s3023_s23, 2048  ;;  %s2548_s29 = scalar_lea.hbm %s3078_s9, 4096 }
 0x412   : > { %p2545_p8 = scmp.ne.s32.totalorder %s3023_s23, %s2544_s19  ;;  %p2549_p4 = scmp.lt.s32.totalorder %s3023_s23, %s3078_s9 }
 0x413   : > { %p2550_p7 = scmp.lt.s32.totalorder %s2548_s29, %s2544_s19 }
 0x414   : > { %p2546_p6 = pnand %p2545_p8, %p3109_p1 }
 0x415   : > { %p2551_p12 = por %p2550_p7, %p2549_p4 }
 0x416   : > { %p2547_p11 = pneg %p2546_p6 }
 0x418   : > { %p2552_p9 = pnand %p2551_p12, %p2547_p11 }
 0x41a   : > { %2555 = shalt.err (!%p2552_p9)
}
 0x41b   : > { %s2622_s1 = smov 128   ;;  %s2623_s11 = smov 8  }
 0x41c   : > { %2209 = dma.vmem_to_hbm [thread:$0]  (%p3109_p1), %s3025_s28, 2048, %s3023_s23, %s1626_s26, %s2622_s1, %s2622_s1, %s2623_s11  }
 0x41d PF: > { %s1676_s3 = sand.u32 1, %s2594_s13   ;;  %p3110_p13 = scmp.ne.s32.totalorder %s3091_s20, 0 }
 0x41e   : > { %p3111_p2 = scmp.ge.s32.totalorder %s2606_s16, 2  ;;  %s1677_s17 = scalar_lea.sflag [#allocation4], %s1676_s3 }
 0x420   : > { %p2231_p0 = pnand %p3111_p2, %p3110_p13 }
 0x422   : > { %p2232_p5 = pneg %p2231_p0 }
 0x424   : > { %2585 = dma.done.wait (%p2232_p5), %s1677_s17, 2048  }
 0x425   : > { %2587 = vsyncadd (%p2232_p5), %s1677_s17, 4294965248  ;;  %s1686_s30 = scalar_lea.sflag [#allocation13], %s1676_s3 }
 0x426   : > { %2589 = dma.done.wait (%p2232_p5), %s1686_s30, 1024  }
 0x427   : > { %2591 = vsyncadd (%p2232_p5), %s1686_s30, 4294966272  ;;  %p29_p1 = scmp.ge.s32.totalorder %s2770_s27, 4   ;;  %s3112_s13 = smov %s2598_s14 }
 0x428   : > { %s3113_s14 = smov %s2602_s15  ;;  %s3114_s15 = smov %s2779_s12 }
 0x429   : > { %s3115_s16 = smov %s2770_s27  ;;  %31 = sbr.rel (!%p29_p1) target bundleno = 14 (0xe), region = 134 }
 0x42e   :  { %1691 = vsyncpa [#allocation3], 1 }
 0x42f   :  { %1693 = vsyncpa [#allocation3 + $0x1], 1 }
 0x430   :  { %1694 = vsyncpa [#allocation6], 1 }
 0x431   :  { %1695 = vsyncpa [#allocation9], 1 }
 0x432   :  { %1696 = vsyncpa [#allocation4], 1 }
 0x433   :  { %1698 = vsyncpa [#allocation4 + $0x1], 1 }
 0x434   :  { %1699 = vsyncpa [#allocation13], 1 }
 0x435   :  { %1701 = vsyncpa [#allocation13 + $0x1], 1 }

</bundles_post_ra>
